<compile_context>
chip_gen: v5e
topology: v5e:2x2
jax: 0.10.0
libtpu: 0.0.40
codegen_flags: <defaults>
</compile_context>

<pallas_src>
import numpy as np
import jax
import jax.numpy as jnp
from jax.experimental import pallas as pl
from jax.experimental.pallas import tpu as pltpu

FEATURE_WEIGHTS = {"landmarks": 1.0, "au": 0.8, "pose": 0.6, "gaze": 0.4}
KL_WEIGHT = 0.0002

_TILE_ROWS = 2048   # rows per grid step when tiling the (B*T) axis
_OUT_SLOTS = 8      # total, rec, kld, up to 5 per-feature losses


def _as_2d(a):
    """Collapse leading dims (metadata-only reshape) -> (rows, last_dim)."""
    a = jnp.asarray(a)
    if a.ndim == 0:
        return a.reshape(1, 1)
    if a.ndim == 1:
        return a.reshape(1, a.shape[-1])
    return a.reshape(-1, a.shape[-1])


def _f32(v):
    return jnp.asarray(v, jnp.float32)


def _make_kernel(n_feat, n_dist, feat_rows, feat_mask, feat_inv_n, feat_w,
                 dist_inv_n, tile_rows, kl_weight):
    """All layout/weight constants are static (closed over)."""

    def kernel(*refs):
        pred_refs = refs[0:n_feat]
        gt_refs = refs[n_feat:2 * n_feat]
        mu_refs = refs[2 * n_feat:2 * n_feat + n_dist]
        sc_refs = refs[2 * n_feat + n_dist:2 * n_feat + 2 * n_dist]
        out_ref = refs[2 * n_feat + 2 * n_dist]
        acc_refs = refs[2 * n_feat + 2 * n_dist + 1:]

        step = pl.program_id(0)

        @pl.when(step == 0)
        def _init():
            for f in range(n_feat):
                acc_refs[f][...] = jnp.zeros_like(acc_refs[f])

        # Per-feature squared-error partial sums.  The axis-0 (row) reduction is
        # dominated by VALU vreg adds; cross-lane XLU work is deferred to the
        # epilogue below.
        for f in range(n_feat):
            d = (pred_refs[f][...].astype(jnp.float32)
                 - gt_refs[f][...].astype(jnp.float32))
            sq = d * d
            if feat_mask[f]:  # partial last block: mask rows past the real extent
                row = step * tile_rows + jax.lax.broadcasted_iota(
                    jnp.int32, sq.shape, 0)
                sq = jnp.where(row < feat_rows[f], sq, 0.0)
            acc_refs[f][...] += jnp.sum(sq, axis=0, keepdims=True)

        @pl.when(step == pl.num_programs(0) - 1)
        def _finalize():
            rec = 0.0
            feats = []
            for f in range(n_feat):
                mse = jnp.sum(acc_refs[f][...]) * feat_inv_n[f]   # folded 1/N
                feats.append(mse)
                rec = rec + feat_w[f] * mse

            if n_dist:
                kl_acc = 0.0
                for i in range(n_dist):
                    mu = mu_refs[i][...].astype(jnp.float32)
                    sc = sc_refs[i][...].astype(jnp.float32)
                    kl = -jnp.log(sc) + 0.5 * (sc * sc + mu * mu - 1.0)
                    kl_acc = kl_acc + jnp.sum(kl) * dist_inv_n[i]  # mean per dist
                kld = kl_acc * (1.0 / n_dist)                      # mean of means
            else:
                kld = 0.0   # matches torch's kld_loss = 0.0 branch

            total = rec + kl_weight * kld

            # Direct scalar stores to the SMEM output.
            out_ref[0] = _f32(total)
            out_ref[1] = _f32(rec)
            out_ref[2] = _f32(kld)
            for i in range(_OUT_SLOTS - 3):
                out_ref[3 + i] = _f32(feats[i]) if i < n_feat else _f32(0.0)

    return kernel


def facial_vae_loss(gt_features, pred_features, dist_locs, dist_scales,
                    kl_weight=KL_WEIGHT):
    """JAX wrapper mirroring FacialVAELoss.forward.

    distributions are represented by parallel lists (dist_locs, dist_scales).
    Returns (total_loss, rec_loss, kld_loss, feature_losses_dict) as f32 scalars.
    """
    names = [n for n in FEATURE_WEIGHTS
             if n in gt_features and n in pred_features]
    n_feat = len(names)
    n_dist = len(dist_locs)
    assert n_feat <= _OUT_SLOTS - 3, "output slot budget exceeded"

    if n_feat == 0 and n_dist == 0:
        z = jnp.float32(0.0)
        return z, z, z, {}

    preds = [_as_2d(pred_features[n]) for n in names]
    gts = [_as_2d(gt_features[n]) for n in names]
    locs = [_as_2d(m) for m in dist_locs]
    scales = [_as_2d(s) for s in dist_scales]
    for p, g in zip(preds, gts):
        assert p.shape == g.shape, "pred/gt feature shape mismatch"

    feat_rows = tuple(int(p.shape[0]) for p in preds)
    feat_cols = tuple(int(p.shape[1]) for p in preds)
    feat_inv_n = tuple(1.0 / float(p.size) for p in preds)
    feat_w = tuple(float(FEATURE_WEIGHTS.get(n, 1.0)) for n in names)
    dist_inv_n = tuple(1.0 / float(m.size) for m in locs)

    # Row tiling: only when every feature shares the same (large) row count.
    rows_same = n_feat > 0 and len(set(feat_rows)) == 1
    if rows_same and feat_rows[0] > _TILE_ROWS:
        tile_rows = _TILE_ROWS
        num_steps = int(pl.cdiv(feat_rows[0], tile_rows))
        tiled = True
    else:
        tile_rows = 0
        num_steps = 1
        tiled = False

    feat_mask = tuple(
        tiled and (feat_rows[f] % tile_rows != 0) for f in range(n_feat))

    def _feat_spec(f):
        if tiled:
            return pl.BlockSpec((tile_rows, feat_cols[f]), lambda i: (i, 0))
        return pl.BlockSpec((feat_rows[f], feat_cols[f]), lambda i: (0, 0))

    in_specs = (
        [_feat_spec(f) for f in range(n_feat)]                    # preds
        + [_feat_spec(f) for f in range(n_feat)]                  # gts
        + [pl.BlockSpec(locs[d].shape, lambda i: (0, 0)) for d in range(n_dist)]
        + [pl.BlockSpec(scales[d].shape, lambda i: (0, 0)) for d in range(n_dist)]
    )
    out_spec = pl.BlockSpec(memory_space=pltpu.MemorySpace.SMEM)
    scratch = [pltpu.VMEM((1, feat_cols[f]), jnp.float32) for f in range(n_feat)]

    kernel = _make_kernel(n_feat, n_dist, feat_rows, feat_mask, feat_inv_n,
                          feat_w, dist_inv_n, tile_rows, float(kl_weight))

    out = pl.pallas_call(
        kernel,
        out_shape=jax.ShapeDtypeStruct((_OUT_SLOTS,), jnp.float32),
        grid=(num_steps,),
        in_specs=in_specs,
        out_specs=out_spec,
        scratch_shapes=scratch,
        compiler_params=pltpu.CompilerParams(
            dimension_semantics=("arbitrary",)),
    )(*preds, *gts, *locs, *scales)

    total, rec, kld = out[0], out[1], out[2]
    feature_losses = {n: out[3 + i] for i, n in enumerate(names)}
    return total, rec, kld, feature_losses


def _reference(gt, pred, locs, scales):
    """Pure-numpy (float64) reference of the torch module semantics."""
    losses = {}
    for n in FEATURE_WEIGHTS:
        if n in gt and n in pred:
            d = np.asarray(pred[n], np.float64) - np.asarray(gt[n], np.float64)
            losses[n] = float(np.mean(d * d))
    rec = sum(FEATURE_WEIGHTS[n] * v for n, v in losses.items())
    klds = []
    for m, s in zip(locs, scales):
        m = np.asarray(m, np.float64)
        s = np.asarray(s, np.float64)
        klds.append(float(np.mean(-np.log(s) + 0.5 * (s * s + m * m - 1.0))))
    kld = float(np.mean(klds)) if klds else 0.0
    return rec + KL_WEIGHT * kld, rec, kld, losses


if __name__ == "__main__":
    base_key = jax.random.PRNGKey(0)
    dims = {"landmarks": 136, "au": 41, "pose": 6, "gaze": 4}
    latent, n_dist = 32, 2

    def run_case(B, T, rtol):
        keys = jax.random.split(jax.random.fold_in(base_key, B * 100003 + T),
                                2 * len(dims) + 2 * n_dist)
        ki = iter(keys)
        gt = {n: jax.random.normal(next(ki), (B, T, d), jnp.float32)
              for n, d in dims.items()}
        pred = {n: jax.random.normal(next(ki), (B, T, d), jnp.float32)
                for n, d in dims.items()}
        locs = [jax.random.normal(next(ki), (B, latent), jnp.float32)
                for _ in range(n_dist)]
        scales = [jax.nn.softplus(jax.random.normal(next(ki), (B, latent),
                                                    jnp.float32)) + 0.1
                  for _ in range(n_dist)]

        total, rec, kld, feats = facial_vae_loss(gt, pred, locs, scales)
        jax.block_until_ready(total)

        rt, rr, rk, rf = _reference(
            {k: np.asarray(v) for k, v in gt.items()},
            {k: np.asarray(v) for k, v in pred.items()},
            [np.asarray(v) for v in locs],
            [np.asarray(v) for v in scales])

        np.testing.assert_allclose(float(total), rt, rtol=rtol, atol=1e-5)
        np.testing.assert_allclose(float(rec), rr, rtol=rtol, atol=1e-5)
        np.testing.assert_allclose(float(kld), rk, rtol=rtol, atol=1e-5)
        for n in dims:
            np.testing.assert_allclose(float(feats[n]), rf[n],
                                       rtol=rtol, atol=1e-5)

    # Small demo shapes (single-block path).
    run_case(B=2, T=8, rtol=1e-5)
    # Larger shapes exercising the row-tiled "arbitrary" grid + partial-block masking.
    run_case(B=2, T=1200, rtol=1e-4)

    print("KERNEL_OK")
</pallas_src>

<mosaic_0001>
module attributes {stable_mosaic.version = 11 : i64} {
  func.func @kernel(%arg0: i32, %arg1: memref<16x136xf32, #tpu.memory_space<vmem>>, %arg2: memref<16x41xf32, #tpu.memory_space<vmem>>, %arg3: memref<16x6xf32, #tpu.memory_space<vmem>>, %arg4: memref<16x4xf32, #tpu.memory_space<vmem>>, %arg5: memref<16x136xf32, #tpu.memory_space<vmem>>, %arg6: memref<16x41xf32, #tpu.memory_space<vmem>>, %arg7: memref<16x6xf32, #tpu.memory_space<vmem>>, %arg8: memref<16x4xf32, #tpu.memory_space<vmem>>, %arg9: memref<2x32xf32, #tpu.memory_space<vmem>>, %arg10: memref<2x32xf32, #tpu.memory_space<vmem>>, %arg11: memref<2x32xf32, #tpu.memory_space<vmem>>, %arg12: memref<2x32xf32, #tpu.memory_space<vmem>>, %arg13: memref<8xf32, #tpu.memory_space<smem>>, %arg14: memref<1x136xf32, #tpu.memory_space<vmem>>, %arg15: memref<1x41xf32, #tpu.memory_space<vmem>>, %arg16: memref<1x6xf32, #tpu.memory_space<vmem>>, %arg17: memref<1x4xf32, #tpu.memory_space<vmem>>) attributes {dimension_semantics = [#tpu.dimension_semantics<arbitrary>], iteration_bounds = array<i64: 1>, scalar_prefetch = 0 : i64, scratch_operands = 4 : i64, tpu.core_type = #tpu.core_type<tc>, window_params = [{pipeline_mode = #tpu.pipeline_mode<synchronous>, transform_indices = @transform_0, window_bounds = array<i64: 16, 136>}, {pipeline_mode = #tpu.pipeline_mode<synchronous>, transform_indices = @transform_1, window_bounds = array<i64: 16, 41>}, {pipeline_mode = #tpu.pipeline_mode<synchronous>, transform_indices = @transform_2, window_bounds = array<i64: 16, 6>}, {pipeline_mode = #tpu.pipeline_mode<synchronous>, transform_indices = @transform_3, window_bounds = array<i64: 16, 4>}, {pipeline_mode = #tpu.pipeline_mode<synchronous>, transform_indices = @transform_4, window_bounds = array<i64: 16, 136>}, {pipeline_mode = #tpu.pipeline_mode<synchronous>, transform_indices = @transform_5, window_bounds = array<i64: 16, 41>}, {pipeline_mode = #tpu.pipeline_mode<synchronous>, transform_indices = @transform_6, window_bounds = array<i64: 16, 6>}, {pipeline_mode = #tpu.pipeline_mode<synchronous>, transform_indices = @transform_7, window_bounds = array<i64: 16, 4>}, {pipeline_mode = #tpu.pipeline_mode<synchronous>, transform_indices = @transform_8, window_bounds = array<i64: 2, 32>}, {pipeline_mode = #tpu.pipeline_mode<synchronous>, transform_indices = @transform_9, window_bounds = array<i64: 2, 32>}, {pipeline_mode = #tpu.pipeline_mode<synchronous>, transform_indices = @transform_10, window_bounds = array<i64: 2, 32>}, {pipeline_mode = #tpu.pipeline_mode<synchronous>, transform_indices = @transform_11, window_bounds = array<i64: 2, 32>}, {transform_indices = @transform_12, window_bounds = array<i64: 8>}]} {
    %c0_i32 = arith.constant 0 : i32
    %0 = arith.cmpi eq, %arg0, %c0_i32 : i32
    %1 = arith.extui %0 : i1 to i32
    %c0_i32_0 = arith.constant 0 : i32
    %2 = arith.cmpi ne, %1, %c0_i32_0 : i32
    scf.if %2 {
      %cst_37 = arith.constant 0.000000e+00 : f32
      %42 = vector.broadcast %cst_37 : f32 to vector<1x136xf32>
      %c0_38 = arith.constant 0 : index
      %c0_39 = arith.constant 0 : index
      %43 = vector.load %arg14[%c0_38, %c0_39] : memref<1x136xf32, #tpu.memory_space<vmem>>, vector<1x136xf32>
      tpu.vector_store %arg14[%c0_38, %c0_39], %42 {strides = array<i32>} : memref<1x136xf32, #tpu.memory_space<vmem>>, vector<1x136xf32>,
      %cst_40 = arith.constant 0.000000e+00 : f32
      %44 = vector.broadcast %cst_40 : f32 to vector<1x41xf32>
      %c0_41 = arith.constant 0 : index
      %c0_42 = arith.constant 0 : index
      %45 = vector.load %arg15[%c0_41, %c0_42] : memref<1x41xf32, #tpu.memory_space<vmem>>, vector<1x41xf32>
      tpu.vector_store %arg15[%c0_41, %c0_42], %44 {strides = array<i32>} : memref<1x41xf32, #tpu.memory_space<vmem>>, vector<1x41xf32>,
      %cst_43 = arith.constant 0.000000e+00 : f32
      %46 = vector.broadcast %cst_43 : f32 to vector<1x6xf32>
      %c0_44 = arith.constant 0 : index
      %c0_45 = arith.constant 0 : index
      %47 = vector.load %arg16[%c0_44, %c0_45] : memref<1x6xf32, #tpu.memory_space<vmem>>, vector<1x6xf32>
      tpu.vector_store %arg16[%c0_44, %c0_45], %46 {strides = array<i32>} : memref<1x6xf32, #tpu.memory_space<vmem>>, vector<1x6xf32>,
      %cst_46 = arith.constant 0.000000e+00 : f32
      %48 = vector.broadcast %cst_46 : f32 to vector<1x4xf32>
      %c0_47 = arith.constant 0 : index
      %c0_48 = arith.constant 0 : index
      %49 = vector.load %arg17[%c0_47, %c0_48] : memref<1x4xf32, #tpu.memory_space<vmem>>, vector<1x4xf32>
      tpu.vector_store %arg17[%c0_47, %c0_48], %48 {strides = array<i32>} : memref<1x4xf32, #tpu.memory_space<vmem>>, vector<1x4xf32>,
    } else {
    }
    %c0 = arith.constant 0 : index
    %c0_1 = arith.constant 0 : index
    %3 = vector.load %arg1[%c0, %c0_1] : memref<16x136xf32, #tpu.memory_space<vmem>>, vector<16x136xf32>
    %c0_2 = arith.constant 0 : index
    %c0_3 = arith.constant 0 : index
    %4 = vector.load %arg5[%c0_2, %c0_3] : memref<16x136xf32, #tpu.memory_space<vmem>>, vector<16x136xf32>
    %5 = arith.subf %3, %4 : vector<16x136xf32>
    %6 = arith.mulf %5, %5 : vector<16x136xf32>
    %c0_4 = arith.constant 0 : index
    %c0_5 = arith.constant 0 : index
    %7 = vector.load %arg14[%c0_4, %c0_5] : memref<1x136xf32, #tpu.memory_space<vmem>>, vector<1x136xf32>
    %cst = arith.constant dense<0.000000e+00> : vector<136xf32>
    %8 = vector.multi_reduction <add>, %6, %cst [0] : vector<16x136xf32> to vector<136xf32>
    %9 = vector.shape_cast %8 : vector<136xf32> to vector<1x136xf32>
    %10 = arith.addf %7, %9 : vector<1x136xf32>
    %c0_6 = arith.constant 0 : index
    %c0_7 = arith.constant 0 : index
    %11 = vector.load %arg14[%c0_6, %c0_7] : memref<1x136xf32, #tpu.memory_space<vmem>>, vector<1x136xf32>
    tpu.vector_store %arg14[%c0_6, %c0_7], %10 {strides = array<i32>} : memref<1x136xf32, #tpu.memory_space<vmem>>, vector<1x136xf32>,
    %c0_8 = arith.constant 0 : index
    %c0_9 = arith.constant 0 : index
    %12 = vector.load %arg2[%c0_8, %c0_9] : memref<16x41xf32, #tpu.memory_space<vmem>>, vector<16x41xf32>
    %c0_10 = arith.constant 0 : index
    %c0_11 = arith.constant 0 : index
    %13 = vector.load %arg6[%c0_10, %c0_11] : memref<16x41xf32, #tpu.memory_space<vmem>>, vector<16x41xf32>
    %14 = arith.subf %12, %13 : vector<16x41xf32>
    %15 = arith.mulf %14, %14 : vector<16x41xf32>
    %c0_12 = arith.constant 0 : index
    %c0_13 = arith.constant 0 : index
    %16 = vector.load %arg15[%c0_12, %c0_13] : memref<1x41xf32, #tpu.memory_space<vmem>>, vector<1x41xf32>
    %cst_14 = arith.constant dense<0.000000e+00> : vector<41xf32>
    %17 = vector.multi_reduction <add>, %15, %cst_14 [0] : vector<16x41xf32> to vector<41xf32>
    %18 = vector.shape_cast %17 : vector<41xf32> to vector<1x41xf32>
    %19 = arith.addf %16, %18 : vector<1x41xf32>
    %c0_15 = arith.constant 0 : index
    %c0_16 = arith.constant 0 : index
    %20 = vector.load %arg15[%c0_15, %c0_16] : memref<1x41xf32, #tpu.memory_space<vmem>>, vector<1x41xf32>
    tpu.vector_store %arg15[%c0_15, %c0_16], %19 {strides = array<i32>} : memref<1x41xf32, #tpu.memory_space<vmem>>, vector<1x41xf32>,
    %c0_17 = arith.constant 0 : index
    %c0_18 = arith.constant 0 : index
    %21 = vector.load %arg3[%c0_17, %c0_18] : memref<16x6xf32, #tpu.memory_space<vmem>>, vector<16x6xf32>
    %c0_19 = arith.constant 0 : index
    %c0_20 = arith.constant 0 : index
    %22 = vector.load %arg7[%c0_19, %c0_20] : memref<16x6xf32, #tpu.memory_space<vmem>>, vector<16x6xf32>
    %23 = arith.subf %21, %22 : vector<16x6xf32>
    %24 = arith.mulf %23, %23 : vector<16x6xf32>
    %c0_21 = arith.constant 0 : index
    %c0_22 = arith.constant 0 : index
    %25 = vector.load %arg16[%c0_21, %c0_22] : memref<1x6xf32, #tpu.memory_space<vmem>>, vector<1x6xf32>
    %cst_23 = arith.constant dense<0.000000e+00> : vector<6xf32>
    %26 = vector.multi_reduction <add>, %24, %cst_23 [0] : vector<16x6xf32> to vector<6xf32>
    %27 = vector.shape_cast %26 : vector<6xf32> to vector<1x6xf32>
    %28 = arith.addf %25, %27 : vector<1x6xf32>
    %c0_24 = arith.constant 0 : index
    %c0_25 = arith.constant 0 : index
    %29 = vector.load %arg16[%c0_24, %c0_25] : memref<1x6xf32, #tpu.memory_space<vmem>>, vector<1x6xf32>
    tpu.vector_store %arg16[%c0_24, %c0_25], %28 {strides = array<i32>} : memref<1x6xf32, #tpu.memory_space<vmem>>, vector<1x6xf32>,
    %c0_26 = arith.constant 0 : index
    %c0_27 = arith.constant 0 : index
    %30 = vector.load %arg4[%c0_26, %c0_27] : memref<16x4xf32, #tpu.memory_space<vmem>>, vector<16x4xf32>
    %c0_28 = arith.constant 0 : index
    %c0_29 = arith.constant 0 : index
    %31 = vector.load %arg8[%c0_28, %c0_29] : memref<16x4xf32, #tpu.memory_space<vmem>>, vector<16x4xf32>
    %32 = arith.subf %30, %31 : vector<16x4xf32>
    %33 = arith.mulf %32, %32 : vector<16x4xf32>
    %c0_30 = arith.constant 0 : index
    %c0_31 = arith.constant 0 : index
    %34 = vector.load %arg17[%c0_30, %c0_31] : memref<1x4xf32, #tpu.memory_space<vmem>>, vector<1x4xf32>
    %cst_32 = arith.constant dense<0.000000e+00> : vector<4xf32>
    %35 = vector.multi_reduction <add>, %33, %cst_32 [0] : vector<16x4xf32> to vector<4xf32>
    %36 = vector.shape_cast %35 : vector<4xf32> to vector<1x4xf32>
    %37 = arith.addf %34, %36 : vector<1x4xf32>
    %c0_33 = arith.constant 0 : index
    %c0_34 = arith.constant 0 : index
    %38 = vector.load %arg17[%c0_33, %c0_34] : memref<1x4xf32, #tpu.memory_space<vmem>>, vector<1x4xf32>
    tpu.vector_store %arg17[%c0_33, %c0_34], %37 {strides = array<i32>} : memref<1x4xf32, #tpu.memory_space<vmem>>, vector<1x4xf32>,
    %c0_i32_35 = arith.constant 0 : i32
    %39 = arith.cmpi eq, %arg0, %c0_i32_35 : i32
    %40 = arith.extui %39 : i1 to i32
    %c0_i32_36 = arith.constant 0 : i32
    %41 = arith.cmpi ne, %40, %c0_i32_36 : i32
    scf.if %41 {
      %c0_37 = arith.constant 0 : index
      %c0_38 = arith.constant 0 : index
      %42 = vector.load %arg14[%c0_37, %c0_38] : memref<1x136xf32, #tpu.memory_space<vmem>>, vector<1x136xf32>
      %43 = vector.shape_cast %42 : vector<1x136xf32> to vector<1x1x136xf32>
      %cst_39 = arith.constant dense<0.000000e+00> : vector<1xf32>
      %44 = vector.multi_reduction <add>, %43, %cst_39 [1, 2] : vector<1x1x136xf32> to vector<1xf32>
      %45 = vector.shape_cast %44 : vector<1xf32> to vector<1x1x1xf32>
      %46 = vector.extract %45[0, 0, 0] : f32 from vector<1x1x1xf32>
      %cst_40 = arith.constant 4.59558825E-4 : f32
      %47 = arith.mulf %46, %cst_40 : f32
      %cst_41 = arith.constant 1.000000e+00 : f32
      %48 = arith.mulf %cst_41, %47 : f32
      %cst_42 = arith.constant 0.000000e+00 : f32
      %49 = arith.addf %cst_42, %48 : f32
      %c0_43 = arith.constant 0 : index
      %c0_44 = arith.constant 0 : index
      %50 = vector.load %arg15[%c0_43, %c0_44] : memref<1x41xf32, #tpu.memory_space<vmem>>, vector<1x41xf32>
      %51 = vector.shape_cast %50 : vector<1x41xf32> to vector<1x1x41xf32>
      %cst_45 = arith.constant dense<0.000000e+00> : vector<1xf32>
      %52 = vector.multi_reduction <add>, %51, %cst_45 [1, 2] : vector<1x1x41xf32> to vector<1xf32>
      %53 = vector.shape_cast %52 : vector<1xf32> to vector<1x1x1xf32>
      %54 = vector.extract %53[0, 0, 0] : f32 from vector<1x1x1xf32>
      %cst_46 = arith.constant 0.00152439019 : f32
      %55 = arith.mulf %54, %cst_46 : f32
      %cst_47 = arith.constant 8.000000e-01 : f32
      %56 = arith.mulf %cst_47, %55 : f32
      %57 = arith.addf %49, %56 : f32
      %c0_48 = arith.constant 0 : index
      %c0_49 = arith.constant 0 : index
      %58 = vector.load %arg16[%c0_48, %c0_49] : memref<1x6xf32, #tpu.memory_space<vmem>>, vector<1x6xf32>
      %59 = vector.shape_cast %58 : vector<1x6xf32> to vector<1x1x6xf32>
      %cst_50 = arith.constant dense<0.000000e+00> : vector<1xf32>
      %60 = vector.multi_reduction <add>, %59, %cst_50 [1, 2] : vector<1x1x6xf32> to vector<1xf32>
      %61 = vector.shape_cast %60 : vector<1xf32> to vector<1x1x1xf32>
      %62 = vector.extract %61[0, 0, 0] : f32 from vector<1x1x1xf32>
      %cst_51 = arith.constant 0.010416667 : f32
      %63 = arith.mulf %62, %cst_51 : f32
      %cst_52 = arith.constant 6.000000e-01 : f32
      %64 = arith.mulf %cst_52, %63 : f32
      %65 = arith.addf %57, %64 : f32
      %c0_53 = arith.constant 0 : index
      %c0_54 = arith.constant 0 : index
      %66 = vector.load %arg17[%c0_53, %c0_54] : memref<1x4xf32, #tpu.memory_space<vmem>>, vector<1x4xf32>
      %67 = vector.shape_cast %66 : vector<1x4xf32> to vector<1x1x4xf32>
      %cst_55 = arith.constant dense<0.000000e+00> : vector<1xf32>
      %68 = vector.multi_reduction <add>, %67, %cst_55 [1, 2] : vector<1x1x4xf32> to vector<1xf32>
      %69 = vector.shape_cast %68 : vector<1xf32> to vector<1x1x1xf32>
      %70 = vector.extract %69[0, 0, 0] : f32 from vector<1x1x1xf32>
      %cst_56 = arith.constant 1.562500e-02 : f32
      %71 = arith.mulf %70, %cst_56 : f32
      %cst_57 = arith.constant 4.000000e-01 : f32
      %72 = arith.mulf %cst_57, %71 : f32
      %73 = arith.addf %65, %72 : f32
      %c0_58 = arith.constant 0 : index
      %c0_59 = arith.constant 0 : index
      %74 = vector.load %arg9[%c0_58, %c0_59] : memref<2x32xf32, #tpu.memory_space<vmem>>, vector<2x32xf32>
      %c0_60 = arith.constant 0 : index
      %c0_61 = arith.constant 0 : index
      %75 = vector.load %arg11[%c0_60, %c0_61] : memref<2x32xf32, #tpu.memory_space<vmem>>, vector<2x32xf32>
      %76 = math.log %75 : vector<2x32xf32>
      %cst_62 = arith.constant 0.000000e+00 : f32
      %77 = vector.broadcast %cst_62 : f32 to vector<2x32xf32>
      %78 = arith.subf %77, %76 : vector<2x32xf32>
      %79 = arith.mulf %75, %75 : vector<2x32xf32>
      %80 = arith.mulf %74, %74 : vector<2x32xf32>
      %81 = arith.addf %79, %80 : vector<2x32xf32>
      %cst_63 = arith.constant 1.000000e+00 : f32
      %82 = vector.broadcast %cst_63 : f32 to vector<2x32xf32>
      %83 = arith.subf %81, %82 : vector<2x32xf32>
      %cst_64 = arith.constant 5.000000e-01 : f32
      %84 = vector.broadcast %cst_64 : f32 to vector<2x32xf32>
      %85 = arith.mulf %84, %83 : vector<2x32xf32>
      %86 = arith.addf %78, %85 : vector<2x32xf32>
      %87 = vector.shape_cast %86 : vector<2x32xf32> to vector<1x2x32xf32>
      %cst_65 = arith.constant dense<0.000000e+00> : vector<1xf32>
      %88 = vector.multi_reduction <add>, %87, %cst_65 [1, 2] : vector<1x2x32xf32> to vector<1xf32>
      %89 = vector.shape_cast %88 : vector<1xf32> to vector<1x1x1xf32>
      %90 = vector.extract %89[0, 0, 0] : f32 from vector<1x1x1xf32>
      %cst_66 = arith.constant 1.562500e-02 : f32
      %91 = arith.mulf %90, %cst_66 : f32
      %cst_67 = arith.constant 0.000000e+00 : f32
      %92 = arith.addf %cst_67, %91 : f32
      %c0_68 = arith.constant 0 : index
      %c0_69 = arith.constant 0 : index
      %93 = vector.load %arg10[%c0_68, %c0_69] : memref<2x32xf32, #tpu.memory_space<vmem>>, vector<2x32xf32>
      %c0_70 = arith.constant 0 : index
      %c0_71 = arith.constant 0 : index
      %94 = vector.load %arg12[%c0_70, %c0_71] : memref<2x32xf32, #tpu.memory_space<vmem>>, vector<2x32xf32>
      %95 = math.log %94 : vector<2x32xf32>
      %cst_72 = arith.constant 0.000000e+00 : f32
      %96 = vector.broadcast %cst_72 : f32 to vector<2x32xf32>
      %97 = arith.subf %96, %95 : vector<2x32xf32>
      %98 = arith.mulf %94, %94 : vector<2x32xf32>
      %99 = arith.mulf %93, %93 : vector<2x32xf32>
      %100 = arith.addf %98, %99 : vector<2x32xf32>
      %cst_73 = arith.constant 1.000000e+00 : f32
      %101 = vector.broadcast %cst_73 : f32 to vector<2x32xf32>
      %102 = arith.subf %100, %101 : vector<2x32xf32>
      %cst_74 = arith.constant 5.000000e-01 : f32
      %103 = vector.broadcast %cst_74 : f32 to vector<2x32xf32>
      %104 = arith.mulf %103, %102 : vector<2x32xf32>
      %105 = arith.addf %97, %104 : vector<2x32xf32>
      %106 = vector.shape_cast %105 : vector<2x32xf32> to vector<1x2x32xf32>
      %cst_75 = arith.constant dense<0.000000e+00> : vector<1xf32>
      %107 = vector.multi_reduction <add>, %106, %cst_75 [1, 2] : vector<1x2x32xf32> to vector<1xf32>
      %108 = vector.shape_cast %107 : vector<1xf32> to vector<1x1x1xf32>
      %109 = vector.extract %108[0, 0, 0] : f32 from vector<1x1x1xf32>
      %cst_76 = arith.constant 1.562500e-02 : f32
      %110 = arith.mulf %109, %cst_76 : f32
      %111 = arith.addf %92, %110 : f32
      %cst_77 = arith.constant 5.000000e-01 : f32
      %112 = arith.mulf %111, %cst_77 : f32
      %cst_78 = arith.constant 2.000000e-04 : f32
      %113 = arith.mulf %cst_78, %112 : f32
      %114 = arith.addf %73, %113 : f32
      %c0_79 = arith.constant 0 : index
      %115 = memref.load %arg13[%c0_79] : memref<8xf32, #tpu.memory_space<smem>>
      memref.store %114, %arg13[%c0_79] : memref<8xf32, #tpu.memory_space<smem>>
      %c1 = arith.constant 1 : index
      %116 = memref.load %arg13[%c1] : memref<8xf32, #tpu.memory_space<smem>>
      memref.store %73, %arg13[%c1] : memref<8xf32, #tpu.memory_space<smem>>
      %c2 = arith.constant 2 : index
      %117 = memref.load %arg13[%c2] : memref<8xf32, #tpu.memory_space<smem>>
      memref.store %112, %arg13[%c2] : memref<8xf32, #tpu.memory_space<smem>>
      %c3 = arith.constant 3 : index
      %118 = memref.load %arg13[%c3] : memref<8xf32, #tpu.memory_space<smem>>
      memref.store %47, %arg13[%c3] : memref<8xf32, #tpu.memory_space<smem>>
      %c4 = arith.constant 4 : index
      %119 = memref.load %arg13[%c4] : memref<8xf32, #tpu.memory_space<smem>>
      memref.store %55, %arg13[%c4] : memref<8xf32, #tpu.memory_space<smem>>
      %c5 = arith.constant 5 : index
      %120 = memref.load %arg13[%c5] : memref<8xf32, #tpu.memory_space<smem>>
      memref.store %63, %arg13[%c5] : memref<8xf32, #tpu.memory_space<smem>>
      %c6 = arith.constant 6 : index
      %121 = memref.load %arg13[%c6] : memref<8xf32, #tpu.memory_space<smem>>
      memref.store %71, %arg13[%c6] : memref<8xf32, #tpu.memory_space<smem>>
      %cst_80 = arith.constant 0.000000e+00 : f32
      %c7 = arith.constant 7 : index
      %122 = memref.load %arg13[%c7] : memref<8xf32, #tpu.memory_space<smem>>
      memref.store %cst_80, %arg13[%c7] : memref<8xf32, #tpu.memory_space<smem>>
    } else {
    }
    return
  }
  func.func @transform_0(%arg0: i32) -> (i32, i32) {
    %c0_i32 = arith.constant 0 : i32
    %c0_i32_0 = arith.constant 0 : i32
    %c0_i32_1 = arith.constant 0 : i32
    return %c0_i32, %c0_i32_0 : i32, i32
  }
  func.func @transform_1(%arg0: i32) -> (i32, i32) {
    %c0_i32 = arith.constant 0 : i32
    %c0_i32_0 = arith.constant 0 : i32
    %c0_i32_1 = arith.constant 0 : i32
    return %c0_i32, %c0_i32_0 : i32, i32
  }
  func.func @transform_2(%arg0: i32) -> (i32, i32) {
    %c0_i32 = arith.constant 0 : i32
    %c0_i32_0 = arith.constant 0 : i32
    %c0_i32_1 = arith.constant 0 : i32
    return %c0_i32, %c0_i32_0 : i32, i32
  }
  func.func @transform_3(%arg0: i32) -> (i32, i32) {
    %c0_i32 = arith.constant 0 : i32
    %c0_i32_0 = arith.constant 0 : i32
    %c0_i32_1 = arith.constant 0 : i32
    return %c0_i32, %c0_i32_0 : i32, i32
  }
  func.func @transform_4(%arg0: i32) -> (i32, i32) {
    %c0_i32 = arith.constant 0 : i32
    %c0_i32_0 = arith.constant 0 : i32
    %c0_i32_1 = arith.constant 0 : i32
    return %c0_i32, %c0_i32_0 : i32, i32
  }
  func.func @transform_5(%arg0: i32) -> (i32, i32) {
    %c0_i32 = arith.constant 0 : i32
    %c0_i32_0 = arith.constant 0 : i32
    %c0_i32_1 = arith.constant 0 : i32
    return %c0_i32, %c0_i32_0 : i32, i32
  }
  func.func @transform_6(%arg0: i32) -> (i32, i32) {
    %c0_i32 = arith.constant 0 : i32
    %c0_i32_0 = arith.constant 0 : i32
    %c0_i32_1 = arith.constant 0 : i32
    return %c0_i32, %c0_i32_0 : i32, i32
  }
  func.func @transform_7(%arg0: i32) -> (i32, i32) {
    %c0_i32 = arith.constant 0 : i32
    %c0_i32_0 = arith.constant 0 : i32
    %c0_i32_1 = arith.constant 0 : i32
    return %c0_i32, %c0_i32_0 : i32, i32
  }
  func.func @transform_8(%arg0: i32) -> (i32, i32) {
    %c0_i32 = arith.constant 0 : i32
    %c0_i32_0 = arith.constant 0 : i32
    %c0_i32_1 = arith.constant 0 : i32
    return %c0_i32, %c0_i32_0 : i32, i32
  }
  func.func @transform_9(%arg0: i32) -> (i32, i32) {
    %c0_i32 = arith.constant 0 : i32
    %c0_i32_0 = arith.constant 0 : i32
    %c0_i32_1 = arith.constant 0 : i32
    return %c0_i32, %c0_i32_0 : i32, i32
  }
  func.func @transform_10(%arg0: i32) -> (i32, i32) {
    %c0_i32 = arith.constant 0 : i32
    %c0_i32_0 = arith.constant 0 : i32
    %c0_i32_1 = arith.constant 0 : i32
    return %c0_i32, %c0_i32_0 : i32, i32
  }
  func.func @transform_11(%arg0: i32) -> (i32, i32) {
    %c0_i32 = arith.constant 0 : i32
    %c0_i32_0 = arith.constant 0 : i32
    %c0_i32_1 = arith.constant 0 : i32
    return %c0_i32, %c0_i32_0 : i32, i32
  }
  func.func @transform_12(%arg0: i32) -> i32 {
    %c0_i32 = arith.constant 0 : i32
    %c0_i32_0 = arith.constant 0 : i32
    return %c0_i32 : i32
  }
}

</mosaic_0001>

<bundles_post_ra>
// kernel: tpu_custom_call.1
= control target key start
LH: loop header
LB: loop body
LE: loop exit
PB: predicated region body
PF: predicated region fallthrough
CT: control target
= control target key end

     0   :  { %17 = vsyncpa [#allocation7], 0  ;;  %s563_s0 = inlined_call_operand.vmem [shape: f32[16,136], index: 0, kind: input, shape index: {}]   ;;  %s564_s1 = inlined_call_operand.vmem [shape: f32[16,41], index: 1, kind: input, shape index: {}]   ;;  %s565_s2 = inlined_call_operand.vmem [shape: f32[16,6], index: 2, kind: input, shape index: {}]   ;;  %s566_s3 = inlined_call_operand.vmem [shape: f32[16,4], index: 3, kind: input, shape index: {}]   ;;  %s567_s4 = inlined_call_operand.hbm [shape: f32[16,136], index: 4, kind: input, shape index: {}]   ;;  %s568_s5 = inlined_call_operand.vmem [shape: f32[16,41], index: 5, kind: input, shape index: {}]   ;;  %s569_s6 = inlined_call_operand.vmem [shape: f32[16,6], index: 6, kind: input, shape index: {}]   ;;  %s570_s7 = inlined_call_operand.vmem [shape: f32[16,4], index: 7, kind: input, shape index: {}]   ;;  %s571_s8 = inlined_call_operand.vmem [shape: f32[2,32], index: 8, kind: input, shape index: {}]   ;;  %s572_s9 = inlined_call_operand.vmem [shape: f32[2,32], index: 9, kind: input, shape index: {}]   ;;  %s573_s10 = inlined_call_operand.vmem [shape: f32[2,32], index: 10, kind: input, shape index: {}]   ;;  %s574_s11 = inlined_call_operand.vmem [shape: f32[2,32], index: 11, kind: input, shape index: {}]   ;;  %s575_s12 = inlined_call_operand.hbm [shape: f32[8], index: 12, kind: output, shape index: {}]  }
   0x1   :  { %18 = vsyncpa [#allocation8], 0  ;;  %s31_s23 = sshll.u32 %s567_s4, 4  ;;  %s397_s24 = smov [#allocation6]   ;;  %s32_s23 = int_to_ptr.hbm [resolvable:$true] %s31_s23 }
   0x2   :  { %s33_s25 = sshll.u32 %s397_s24, 4  ;;  %s398_s26 = smov 256   ;;  %s34_s25 = int_to_ptr.vmem [resolvable:$true] %s33_s25 }
   0x3   :  { %s399_s27 = smov 16  }
   0x4   :  { %39 = dma.hbm_to_vmem [thread:$0]  %s32_s23, 512, %s34_s25, [#allocation7], %s398_s26, %s398_s26, %s399_s27  }
   0x5   :  { %393 = dma.done.wait [#allocation7], 512  }
   0x6   :  { %394 = vsyncadd [#allocation7], 4294966784  ;;  %v62_v0 = vlaneseq  ;;  %vm69_vm0 = vcmask 40960   ;;  %v400_v1 = vmov 0.0   ;;  %vm71_vm2 = vcmask 24576   ;;  %v141_v5 = vld [vmem:[%s565_s2] sm:$0xff] }
   0x7   :  { %70 = vst.msk [vmem:[#allocation4] sm:$0x1] %vm69_vm0, %v400_v1  ;;  %vm67_vm3 = vcmask 327680   ;;  %v251_v3 = vld [vmem:[%s571_s8] sm:$0x3]  ;;  %v142_v8 = vld [vmem:[%s565_s2 + $0x8] sm:$0xff] }
   0x8   :  { %vm472_vm1 = vcmp.lt.s32.totalorder %v62_v0, 136  ;;  %72 = vst.msk [vmem:[#allocation5] sm:$0x1] %vm71_vm2, %v400_v1  ;;  %v252_v4 = vld [vmem:[%s573_s10] sm:$0x3]  ;;  %v257_v7 = vmul.f32 %v251_v3, %v251_v3  ;;  %v144_v10 = vld [vmem:[%s569_s6 + $0x8] sm:$0xff] }
   0x9   :  { %66 = vst.msk [vmem:[#allocation2] sm:$0x3] %vm472_vm1, %v400_v1  ;;  %353 = vlog2.f32 %v252_v4  ;;  %v256_v6 = vmul.f32 %v252_v4, %v252_v4  ;;  %v143_v9 = vld [vmem:[%s569_s6] sm:$0xff]  ;;  %v146_v12 = vsub.f32 %v142_v8, %v144_v10  ;;  %v74_v14 = vld [vmem:[%s563_s0 + $0x8] sm:$0xff]  ;;  %vm262_vm4 = vcmask 254976   ;;  %v75_v16 = vld [vmem:[%s563_s0 + $0x10] sm:$0xff] }
   0xa   :  { %68 = vst.msk [vmem:[#allocation3] sm:$0x1] %vm67_vm3, %v400_v1  ;;  %v145_v11 = vsub.f32 %v141_v5, %v143_v9  ;;  %v73_v13 = vld [vmem:[%s563_s0] sm:$0xff]  ;;  %vm150_vm5 = vcmask 48128   ;;  %v76_v17 = vld [vmem:[%s563_s0 + $0x18] sm:$0xff]  ;;  %v78_v21 = vld [vmem:[#allocation6 + $0x8] sm:$0xff] }
   0xb   :  { %v258_v15 = vadd.f32 %v257_v7, %v256_v6  ;;  %v77_v18 = vld [vmem:[#allocation6] sm:$0xff]  ;;  %v148_v20 = vmul.f32 %v146_v12, %v146_v12  ;;  %v79_v22 = vld [vmem:[#allocation6 + $0x10] sm:$0xff]  ;;  %v80_v23 = vld [vmem:[#allocation6 + $0x18] sm:$0xff]  ;;  %vm97_vm6 = vcmask 64512   ;;  %v82_v26 = vsub.f32 %v74_v14, %v78_v21 }
   0xc   :  { %v147_v19 = vmul.f32 %v145_v11, %v145_v11  ;;  %v81_v24 = vsub.f32 %v73_v13, %v77_v18  ;;  %v83_v27 = vsub.f32 %v75_v16, %v79_v22  ;;  %v84_v28 = vsub.f32 %v76_v17, %v80_v23  ;;  %v275_v29 = vld [vmem:[%s572_s9] sm:$0x3]  ;;  %v164_v40 = vld [vmem:[%s566_s3 + $0x8] sm:$0xff] }
   0xd   :  { %v333_v25 = vadd.f32 -1.0, %v258_v15  ;;  %v152_v31 = vsel %vm150_vm5, %v148_v20, 0.0  ;;  %v276_v33 = vld [vmem:[%s574_s11] sm:$0x3]  ;;  %vm172_vm7 = vcmask 31744   ;;  %v86_v37 = vmul.f32 %v82_v26, %v82_v26  ;;  %v166_v42 = vld [vmem:[%s570_s7 + $0x8] sm:$0xff] }
   0xe   :  { %v151_v30 = vsel %vm150_vm5, %v147_v19, 0.0  ;;  %v85_v32 = vmul.f32 %v81_v24, %v81_v24  ;;  %v163_v34 = vld [vmem:[%s566_s3] sm:$0xff]  ;;  %v87_v38 = vmul.f32 %v83_v27, %v83_v27  ;;  %v281_v39 = vmul.f32 %v275_v29, %v275_v29  ;;  %v120_v60 = vld [vmem:[%s564_s1 + $0x8] sm:$0xff]  ;;  %s322_s3 = sshll.u32 %s575_s12, 4  ;;  %s323_s3 = int_to_ptr.hbm [resolvable:$true] %s322_s3 }
   0xf   :  { %v354_v35 = vpop.eup %353  ;;  %v153_v36 = vadd.f32 %v152_v31, %v151_v30  ;;  %v165_v41 = vld [vmem:[%s570_s7] sm:$0xff]  ;;  %vm128_vm8 = vcmask 334848   ;;  %v260_v44 = vmul.f32 0.5, %v333_v25  ;;  %v88_v45 = vmul.f32 %v84_v28, %v84_v28  ;;  %v122_v61 = vld [vmem:[%s568_s5 + $0x8] sm:$0xff]  ;;  %s402_s7 = smov [#allocation9]  }
  0x10   :  { %v254_v43 = vmul.f32 0.6931472, %v354_v35  ;;  %355 = vlog2.f32 %v276_v33  ;;  %v90_v47 = vadd.f32 %v87_v38, %v85_v32  ;;  %v98_v48 = vsel %vm97_vm6, %v86_v37, 0.0  ;;  %v119_v50 = vld [vmem:[%s564_s1] sm:$0xff]  ;;  %s401_s1 = smov 0.0  }
  0x11   :  { %v154_v46 = vrot.slane %v153_v36, 4  ;;  %v280_v49 = vmul.f32 %v276_v33, %v276_v33  ;;  %v121_v51 = vld [vmem:[%s568_s5] sm:$0xff]  ;;  %v99_v53 = vsel %vm97_vm6, %v88_v45, 0.0  ;;  %v167_v54 = vsub.f32 %v163_v34, %v165_v41  ;;  %316 = sst [smem:[#allocation9 + $0x7]] %s401_s1 }
  0x12   :  { %v255_v52 = vsub.f32 0.0, %v254_v43  ;;  %v168_v55 = vsub.f32 %v164_v40, %v166_v42  ;;  %v91_v57 = vrot.slane %v90_v47, 4  ;;  %v100_v58 = vadd.f32 %v99_v53, %v98_v48  ;;  %v149_v24 = vld [vmem:[#allocation4] sm:$0x1]  ;;  %v89_v43 = vld [vmem:[#allocation2] sm:$0x3] }
  0x13   :  { %v155_v56 = vadd.f32 %v154_v46, %v153_v36  ;;  %v282_v59 = vadd.f32 %v281_v39, %v280_v49  ;;  %v169_v63 = vmul.f32 %v167_v54, %v167_v54  ;;  %v123_v1 = vsub.f32 %v119_v50, %v121_v51  ;;  %v171_v48 = vld [vmem:[#allocation5] sm:$0x1] }
  0x14   :  { %v261_v62 = vadd.f32 %v260_v44, %v255_v52  ;;  %v170_v0 = vmul.f32 %v168_v55, %v168_v55  ;;  %v92_v4 = vadd.f32 %v91_v57, %v90_v47  ;;  %v101_v5 = vrot.slane %v100_v58, 4 }
  0x15   :  { %v156_v3 = vrot.slane %v155_v56, 2  ;;  %v334_v6 = vadd.f32 -1.0, %v282_v59  ;;  %v173_v9 = vsel %vm172_vm7, %v169_v63, 0.0  ;;  %v124_v11 = vsub.f32 %v120_v60, %v122_v61 }
  0x16   :  { %v356_v7 = vpop.eup %355  ;;  %v263_v8 = vsel %vm262_vm4, %v261_v62, 0.0  ;;  %v174_v10 = vsel %vm172_vm7, %v170_v0, 0.0  ;;  %v93_v13 = vrot.slane %v92_v4, 2  ;;  %v102_v14 = vadd.f32 %v101_v5, %v100_v58 }
  0x17   :  { %264 = vadd.xlane.f32.xlu2 %v263_v8  ;;  %v157_v12 = vadd.f32 %v156_v3, %v155_v56  ;;  %v278_v15 = vmul.f32 0.6931472, %v356_v7  ;;  %v284_v16 = vmul.f32 0.5, %v334_v6  ;;  %v175_v17 = vadd.f32 %v174_v10, %v173_v9  ;;  %v127_v56 = vld [vmem:[#allocation3] sm:$0x1] }
  0x18   :  { %v125_v18 = vmul.f32 %v123_v1, %v123_v1  ;;  %v126_v19 = vmul.f32 %v124_v11, %v124_v11  ;;  %v94_v21 = vadd.f32 %v93_v13, %v92_v4  ;;  %v103_v22 = vrot.slane %v102_v14, 2 }
  0x19   :  { %v158_v20 = vrot.slane %v157_v12, 1  ;;  %v279_v23 = vsub.f32 0.0, %v278_v15  ;;  %v176_v25 = vrot.slane %v175_v17, 4  ;;  %vm110_vm9 = vcmask 1040384  }
  0x1a   :  { %v129_v26 = vsel %vm128_vm8, %v125_v18, 0.0  ;;  %v130_v27 = vsel %vm128_vm8, %v126_v19, 0.0  ;;  %v95_v29 = vrot.slane %v94_v21, 1  ;;  %v104_v30 = vadd.f32 %v103_v22, %v102_v14 }
  0x1b   :  { %v159_v28 = vadd.f32 %v158_v20, %v157_v12  ;;  %v285_v31 = vadd.f32 %v284_v16, %v279_v23  ;;  %v177_v32 = vadd.f32 %v176_v25, %v175_v17  ;;  %v131_v33 = vadd.f32 %v130_v27, %v129_v26 }
  0x1c   :  { %v105_v35 = vrot.slane %v104_v30, 1  ;;  %v96_v39 = vadd.f32 %v95_v29, %v94_v21  ;;  %vm195_vm10 = vcmask 57344  }
  0x1d   :  { %v160_v34 = vadd.f32 %v159_v28, %v149_v24  ;;  %v286_v36 = vsel %vm262_vm4, %v285_v31, 0.0  ;;  %v178_v37 = vrot.slane %v177_v32, 2  ;;  %v132_v38 = vrot.slane %v131_v33, 4 }
  0x1e   :  { %v106_v40 = vadd.f32 %v105_v35, %v104_v30 }
  0x1f   :  { %162 = vst.msk [vmem:[#allocation4] sm:$0x1] %vm69_vm0, %v160_v34  ;;  %287 = vadd.xlane.f32.xlu2 %v286_v36  ;;  %v179_v41 = vadd.f32 %v178_v37, %v177_v32  ;;  %v133_v42 = vadd.f32 %v132_v38, %v131_v33 }
  0x20   :  { %v109_v44 = vrot.slane %v106_v40, 7 }
  0x21   :  { %v180_v45 = vrot.slane %v179_v41, 1  ;;  %v134_v46 = vrot.slane %v133_v42, 2 }
  0x22   :  { %v111_v47 = vsel %vm110_vm9, %v96_v39, %v109_v44 }
  0x23   :  { %v113_v49 = vadd.f32 %v111_v47, %v89_v43  ;;  %v181_v50 = vadd.f32 %v180_v45, %v179_v41  ;;  %v135_v51 = vadd.f32 %v134_v46, %v133_v42 }
  0x25   :  { %118 = vst.msk [vmem:[#allocation2] sm:$0x3] %vm472_vm1, %v113_v49  ;;  %v182_v53 = vadd.f32 %v181_v50, %v171_v48  ;;  %v136_v54 = vrot.slane %v135_v51, 1 }
  0x26   :  { %v223_v52 = vld [vmem:[#allocation4] sm:$0x1] }
  0x27   :  { %v224_v55 = vsel %vm69_vm0, %v223_v52, 0.0  ;;  %184 = vst.msk [vmem:[#allocation5] sm:$0x1] %vm71_vm2, %v182_v53  ;;  %v137_v57 = vadd.f32 %v136_v54, %v135_v51 }
  0x28   :  { %225 = vadd.xlane.f32.xlu1 %v224_v55 }
  0x29   :  { %v138_v58 = vadd.f32 %v137_v57, %v127_v56 }
  0x2b   :  { %140 = vst.msk [vmem:[#allocation3] sm:$0x1] %vm67_vm3, %v138_v58 }
  0x2c   :  { %v188_v59 = vld [vmem:[#allocation2] sm:$0x3] }
  0x2d   :  { %v190_v60 = vperm.slane %v188_v59, 0  ;;  %v191_v61 = vperm.slane %v188_v59, 1 }
  0x2e   :  { %v237_v62 = vld [vmem:[#allocation5] sm:$0x1] }
  0x2f   :  { %v194_v2 = vsel %vm110_vm9, %v190_v60, 0.0  ;;  %v196_v63 = vsel %vm195_vm10, %v191_v61, 0.0  ;;  %v238_v0 = vsel %vm71_vm2, %v237_v62, 0.0 }
  0x30   :  { %v197_v1 = vadd.f32 %v196_v63, %v194_v2  ;;  %239 = vadd.xlane.f32.xlu1 %v238_v0 }
  0x32   :  { %198 = vadd.xlane.f32.xlu0 %v197_v1  ;;  %v209_v3 = vld [vmem:[#allocation3] sm:$0x1] }
  0x33   :  { %v210_v4 = vsel %vm67_vm3, %v209_v3, 0.0 }
  0x3a   :  { %211 = vadd.xlane.f32.xlu0 %v210_v4 }
  0x8a   :  { %v265_v6 = vpop.xlane.xlu2 %264 }
  0x8b   :  { %v266_v13 = vrot.slane %v265_v6, 4 }
  0x8d   :  { %v267_v19 = vadd.f32 %v266_v13, %v265_v6 }
  0x8f   :  { %v268_v27 = vrot.slane %v267_v19, 2 }
  0x91   :  { %v269_v34 = vadd.f32 %v268_v27, %v267_v19 }
  0x92   :  { %v288_v10 = vpop.xlane.xlu2 %287 }
  0x93   :  { %v289_v15 = vrot.slane %v288_v10, 4  ;;  %v270_v40 = vrot.slane %v269_v34, 1 }
  0x95   :  { %v290_v20 = vadd.f32 %v289_v15, %v288_v10  ;;  %v271_v45 = vadd.f32 %v270_v40, %v269_v34 }
  0x97   :  { %v291_v28 = vrot.slane %v290_v20, 2 }
  0x99   :  { %v292_v35 = vadd.f32 %v291_v28, %v290_v20 }
  0x9b   :  { %v226_v5 = vpop.xlane.xlu1 %225  ;;  %v293_v42 = vrot.slane %v292_v35, 1 }
  0x9c   :  { %v227_v8 = vrot.slane %v226_v5, 4 }
  0x9d   :  { %v294_v46 = vadd.f32 %v293_v42, %v292_v35 }
  0x9e   :  { %v228_v16 = vadd.f32 %v227_v8, %v226_v5 }
  0xa0   :  { %v229_v22 = vrot.slane %v228_v16, 2 }
  0xa2   :  { %v230_v31 = vadd.f32 %v229_v22, %v228_v16 }
  0xa3   :  { %v240_v7 = vpop.xlane.xlu1 %239 }
  0xa4   :  { %v241_v12 = vrot.slane %v240_v7, 4  ;;  %v231_v37 = vrot.slane %v230_v31, 1 }
  0xa5   :  { %v199_v9 = vpop.xlane.xlu0 %198 }
  0xa6   :  { %v200_v11 = vrot.slane %v199_v9, 4  ;;  %v242_v18 = vadd.f32 %v241_v12, %v240_v7  ;;  %v232_v43 = vadd.f32 %v231_v37, %v230_v31 }
  0xa8   :  { %v201_v14 = vadd.f32 %v200_v11, %v199_v9  ;;  %v243_v24 = vrot.slane %v242_v18, 2 }
  0xaa   :  { %v202_v17 = vrot.slane %v201_v14, 2  ;;  %v244_v32 = vadd.f32 %v243_v24, %v242_v18 }
  0xac   :  { %v203_v21 = vadd.f32 %v202_v17, %v201_v14  ;;  %v245_v39 = vrot.slane %v244_v32, 1 }
  0xad   :  { %v212_v23 = vpop.xlane.xlu0 %211 }
  0xae   :  { %v213_v25 = vrot.slane %v212_v23, 4  ;;  %v204_v26 = vrot.slane %v203_v21, 1  ;;  %v246_v44 = vadd.f32 %v245_v39, %v244_v32 }
  0xb0   :  { %v214_v29 = vadd.f32 %v213_v25, %v212_v23  ;;  %v205_v30 = vadd.f32 %v204_v26, %v203_v21 }
  0xb2   :  { %v215_v33 = vrot.slane %v214_v29, 2  ;;  %335 = vpush %v205_v30 }
  0xb4   :  { %v216_v36 = vadd.f32 %v215_v33, %v214_v29 }
  0xb6   :  { %v217_v38 = vrot.slane %v216_v36, 1 }
  0xb8   :  { %v218_v41 = vadd.f32 %v217_v38, %v216_v36 }
  0xba   :  { %337 = vpush %v218_v41 }
  0xbb   :  { %339 = vpush %v232_v43 }
  0xbc   :  { %341 = vpush %v246_v44 }
  0xbd   :  { %343 = vpush %v271_v45 }
  0xbe   :  { %345 = vpush %v294_v46 }
  0xe3   :  { %s336_s5 = spop %335 }
  0xe4   :  { %s207_s10 = smul.f32 0.00045955883, %s336_s5 }
  0xe6   :  { %308 = sst [smem:[#allocation9 + $0x3]] %s207_s10 }
  0xeb   :  { %s338_s20 = spop %337 }
  0xec   :  { %s220_s21 = smul.f32 0.0015243902, %s338_s20  ;;  %s340_s22 = spop %339 }
  0xed   :  { %s234_s2 = smul.f32 0.010416667, %s340_s22  ;;  %s342_s23 = spop %341 }
  0xee   :  { %s221_s6 = smul.f32 0.8, %s220_s21  ;;  %310 = sst [smem:[#allocation9 + $0x4]] %s220_s21 }
  0xef   :  { %s235_s24 = smul.f32 0.6, %s234_s2  ;;  %312 = sst [smem:[#allocation9 + $0x5]] %s234_s2 }
  0xf0   :  { %s222_s25 = sadd.f32 %s221_s6, %s207_s10  ;;  %s248_s26 = smul.f32 0.015625, %s342_s23 }
  0xf1   :  { %s344_s0 = spop %343 }
  0xf2   :  { %s236_s27 = sadd.f32 %s235_s24, %s222_s25  ;;  %s249_s4 = smul.f32 0.4, %s248_s26 }
  0xf3   :  { %314 = sst [smem:[#allocation9 + $0x6]] %s248_s26  ;;  %s273_s28 = smul.f32 0.015625, %s344_s0 }
  0xf4   :  { %s250_s9 = sadd.f32 %s249_s4, %s236_s27  ;;  %s346_s29 = spop %345 }
  0xf5   :  { %s296_s30 = smul.f32 0.015625, %s346_s29 }
  0xf6   :  { %304 = sst [smem:[#allocation9 + $0x1]] %s250_s9 }
  0xf7   :  { %s297_s13 = sadd.f32 %s296_s30, %s273_s28 }
  0xf9   :  { %s298_s14 = smul.f32 0.5, %s297_s13 }
  0xfb   :  { %s299_s16 = smul.f32 0.0002, %s298_s14  ;;  %306 = sst [smem:[#allocation9 + $0x2]] %s298_s14 }
  0xfd   :  { %s300_s17 = sadd.f32 %s299_s16, %s250_s9 }
  0xff   :  { %302 = sst [smem:[#allocation9]] %s300_s17 }
 0x100   :  { %325 = dma.smem_to_hbm %s402_s7, 16, %s323_s3, [#allocation8]  }
 0x101   :  { %395 = dma.done.wait [#allocation8], 16  }
 0x102   :  { %396 = vsyncadd [#allocation8], 4294967280 }
 0x103   :  { %330 = sfence }
 0x104   :  { %331 = vsyncpa [#allocation7], 1 }
 0x105   :  { %332 = vsyncpa [#allocation8], 1 }

</bundles_post_ra>
